<compile_context>
chip_gen: v6e
topology: v6e:2x2x1
jax: 0.10.0
libtpu: 0.0.40
codegen_flags: <defaults>
</compile_context>

<pallas_src>
import functools
import math

import jax
import jax.numpy as jnp
from jax.experimental import pallas as pl
from jax.experimental.pallas import tpu as pltpu

LEAKY_SLOPE = 0.2
LN_EPS = 1e-5    # TODO(synk): Transformer submodule source not given; nn.LayerNorm default eps assumed.
IN_EPS = 1e-5    # torch.nn.InstanceNorm1d default eps
BF16 = jnp.bfloat16


def _leaky(x):
    return jnp.where(x >= 0, x, LEAKY_SLOPE * x)


def _gelu_tanh(x):
    # TODO(synk): FFN activation assumed tanh-GELU (BERT-style Transformer submodule not given).
    c = math.sqrt(2.0 / math.pi)
    return 0.5 * x * (1.0 + jnp.tanh(c * (x + 0.044715 * x * x * x)))


# --------------------- single-buffer (Buffered(1)) support probe -----------------------

_CONST_PIPELINE_CACHE = "unset"


def _probe_single_buffer():
    """Check that pipeline_mode=pl.Buffered(1) compiles & runs; else fall back."""
    try:
        buf1 = pl.Buffered(1)

        def k(x_ref, o_ref):
            o_ref[...] = x_ref[...] * 2.0

        x = jnp.ones((8, 128), jnp.float32)
        out = pl.pallas_call(
            k,
            out_shape=jax.ShapeDtypeStruct((8, 128), jnp.float32),
            grid=(1,),
            in_specs=[pl.BlockSpec((8, 128), lambda i: (0, 0), pipeline_mode=buf1)],
            out_specs=pl.BlockSpec((8, 128), lambda i: (0, 0)),
        )(x)
        jax.block_until_ready(out)
        return buf1
    except Exception:
        return None


def _const_pipeline():
    global _CONST_PIPELINE_CACHE
    if _CONST_PIPELINE_CACHE == "unset":
        _CONST_PIPELINE_CACHE = _probe_single_buffer()
    return _CONST_PIPELINE_CACHE


def _const_spec(block_shape, index_map):
    """BlockSpec for grid-invariant operands (weights/bias/PE): single-buffered if possible."""
    pm = _const_pipeline()
    if pm is None:
        return pl.BlockSpec(block_shape, index_map)
    return pl.BlockSpec(block_shape, index_map, pipeline_mode=pm)


# ----------------------------------- Pallas kernels ------------------------------------

def matmul_bias_kernel(x_ref, w_ref, b_ref, o_ref, *, act):
    # x:(tm,K), w:(K,N) bf16, b:(1,N) f32 -> o:(tm,N)   (f32 accumulation)
    y = jnp.dot(x_ref[...].astype(BF16), w_ref[...].astype(BF16),
                preferred_element_type=jnp.float32) + b_ref[...]
    if act == "leaky":
        y = _leaky(y)
    elif act == "gelu":
        y = _gelu_tanh(y)
    o_ref[...] = y.astype(o_ref.dtype)


def matmul_bias_add_ln_kernel(x_ref, w_ref, b_ref, res_ref, g_ref, beta_ref, o_ref):
    # fused: (x @ w + b) + residual -> LayerNorm(gamma, beta) over channels (f32 math)
    y = jnp.dot(x_ref[...].astype(BF16), w_ref[...].astype(BF16),
                preferred_element_type=jnp.float32) + b_ref[...]
    z = res_ref[...].astype(jnp.float32) + y
    mean = jnp.mean(z, axis=-1, keepdims=True)
    var = jnp.mean((z - mean) ** 2, axis=-1, keepdims=True)
    o_ref[...] = ((z - mean) * jax.lax.rsqrt(var + LN_EPS) * g_ref[...]
                  + beta_ref[...]).astype(o_ref.dtype)


def emb_pe_kernel(x_ref, w_ref, b_ref, pe_ref, o_ref):
    # fused LinearEmbedding + positional-encoding add; PE block shared across the batch grid
    y = jnp.dot(x_ref[...].astype(BF16), w_ref[...].astype(BF16),
                preferred_element_type=jnp.float32) + b_ref[...]
    o_ref[...] = (y + pe_ref[...]).astype(o_ref.dtype)


def conv_in_kernel(xp_ref, w_ref, b_ref, o_ref, *, ksize, out_t):
    # per-batch fused Conv1d (in-kernel im2col: K shifted slices + accumulating matmuls)
    # + LeakyReLU + InstanceNorm1d over time.
    # xp:(T+K-1, C) bf16, w:(K, Cin, Cout) bf16, b:(1, Cout) f32 -> o:(T, Cout)
    xp = xp_ref[...].astype(BF16)
    cout = w_ref.shape[2]
    acc = jnp.zeros((out_t, cout), jnp.float32)
    for k in range(ksize):   # static unroll: K accumulating MXU matmuls, no HBM im2col
        acc = acc + jnp.dot(xp[k:k + out_t, :], w_ref[k].astype(BF16),
                            preferred_element_type=jnp.float32)
    y = _leaky(acc + b_ref[...])
    mean = jnp.mean(y, axis=0, keepdims=True)
    var = jnp.mean((y - mean) ** 2, axis=0, keepdims=True)   # biased, like PyTorch IN
    o_ref[...] = ((y - mean) * jax.lax.rsqrt(var + IN_EPS)).astype(o_ref.dtype)
    # TODO(synk): for very long T on v7x, split conv+LeakyReLU from the IN reduction
    # (two-pass stats) so the time axis can be tiled.


def attn_block_kernel(x_ref, wqkv_ref, bqkv_ref, wo_ref, bo_ref, g_ref, beta_ref, o_ref,
                      *, num_heads, scale):
    # Whole attention block per batch element (mask is None in the module):
    #   qkv = x @ Wqkv + b ; per-head softmax attention ; ctx @ Wo + b ; +x ; LayerNorm
    x = x_ref[...].astype(BF16)                                            # (T, D)
    qkv = jnp.dot(x, wqkv_ref[...].astype(BF16),
                  preferred_element_type=jnp.float32) + bqkv_ref[...]      # (T, 3D) f32
    d_model = qkv.shape[1] // 3
    dh = d_model // num_heads

    ctx_parts = []
    for h in range(num_heads):                     # static unroll; live scores are (T, T)
        q = (qkv[:, h * dh:(h + 1) * dh] * scale).astype(BF16)             # scale folded in
        k = qkv[:, d_model + h * dh: d_model + (h + 1) * dh].astype(BF16)
        v = qkv[:, 2 * d_model + h * dh: 2 * d_model + (h + 1) * dh].astype(BF16)
        s = jax.lax.dot_general(q, k, (((1,), (1,)), ((), ())),
                                preferred_element_type=jnp.float32)        # (T, T)
        m = jnp.max(s, axis=-1, keepdims=True)
        p = jnp.exp(s - m)
        p = p * pl.reciprocal(jnp.sum(p, axis=-1, keepdims=True), approx=True)
        ctx_parts.append(jnp.dot(p.astype(BF16), v,
                                 preferred_element_type=jnp.float32))      # (T, dh)
    ctx = jnp.concatenate(ctx_parts, axis=-1)                              # (T, D), lane-dense

    y = jnp.dot(ctx.astype(BF16), wo_ref[...].astype(BF16),
                preferred_element_type=jnp.float32) + bo_ref[...]
    z = x.astype(jnp.float32) + y
    mean = jnp.mean(z, axis=-1, keepdims=True)
    var = jnp.mean((z - mean) ** 2, axis=-1, keepdims=True)
    o_ref[...] = ((z - mean) * jax.lax.rsqrt(var + LN_EPS) * g_ref[...]
                  + beta_ref[...]).astype(o_ref.dtype)


# ---------------------------------- pallas_call wrappers -------------------------------

_PARALLEL1 = pltpu.CompilerParams(dimension_semantics=("parallel",))


def _row_tiling(M, target=512):
    """Row-tile size / grid steps / padded M.  target≈512 hits ~85% of the HBM roofline
    on v5e/v6e (128 MiB VMEM); on v7x (64 MiB) shrink target or N-tile the FFN weights."""
    grid = max(1, -(-M // target))
    tm = -(-M // grid)
    tm = -(-tm // 8) * 8          # multiple of 8 sublanes
    return tm, grid, grid * tm


def _pad_rows(x, m_pad):
    m = x.shape[0]
    return x if m_pad == m else jnp.pad(x, ((0, m_pad - m), (0, 0)))


def pallas_linear(x, w, b, act=None, out_dtype=BF16):
    M, K = x.shape
    N = w.shape[1]
    tm, gm, Mp = _row_tiling(M)
    out = pl.pallas_call(
        functools.partial(matmul_bias_kernel, act=act),
        out_shape=jax.ShapeDtypeStruct((Mp, N), out_dtype),
        grid=(gm,),
        in_specs=[pl.BlockSpec((tm, K), lambda i: (i, 0)),
                  _const_spec((K, N), lambda i: (0, 0)),
                  _const_spec((1, N), lambda i: (0, 0))],
        out_specs=pl.BlockSpec((tm, N), lambda i: (i, 0)),
        compiler_params=_PARALLEL1,
    )(_pad_rows(x, Mp), w, b.reshape(1, N))
    return out if Mp == M else out[:M]


def pallas_linear_add_ln(x, w, b, res, gamma, beta, out_dtype=BF16):
    M, K = x.shape
    N = w.shape[1]
    tm, gm, Mp = _row_tiling(M)
    out = pl.pallas_call(
        matmul_bias_add_ln_kernel,
        out_shape=jax.ShapeDtypeStruct((Mp, N), out_dtype),
        grid=(gm,),
        in_specs=[pl.BlockSpec((tm, K), lambda i: (i, 0)),
                  _const_spec((K, N), lambda i: (0, 0)),
                  _const_spec((1, N), lambda i: (0, 0)),
                  pl.BlockSpec((tm, N), lambda i: (i, 0)),
                  _const_spec((1, N), lambda i: (0, 0)),
                  _const_spec((1, N), lambda i: (0, 0))],
        out_specs=pl.BlockSpec((tm, N), lambda i: (i, 0)),
        compiler_params=_PARALLEL1,
    )(_pad_rows(x, Mp), w, b.reshape(1, N), _pad_rows(res, Mp),
      gamma.reshape(1, N), beta.reshape(1, N))
    return out if Mp == M else out[:M]


def pallas_emb_pe(x, w, b, pe):
    # x: (B*T, D) flat; pe: (T, D) shared across batch via a constant index_map (no tile)
    M, K = x.shape
    N = w.shape[1]
    T = pe.shape[0]
    B = M // T
    return pl.pallas_call(
        emb_pe_kernel,
        out_shape=jax.ShapeDtypeStruct((M, N), BF16),
        grid=(B,),
        in_specs=[pl.BlockSpec((T, K), lambda i: (i, 0)),
                  _const_spec((K, N), lambda i: (0, 0)),
                  _const_spec((1, N), lambda i: (0, 0)),
                  _const_spec((T, N), lambda i: (0, 0))],
        out_specs=pl.BlockSpec((T, N), lambda i: (i, 0)),
        compiler_params=_PARALLEL1,
    )(x, w, b.reshape(1, N), pe)


def pallas_conv_squash(x, w, b):
    # x: (B, T, C) bf16; w: (K, Cin, Cout) bf16; b: (Cout,) f32  ->  (B*T, Cout) bf16
    B, T, C = x.shape
    K = w.shape[0]
    pad = K // 2
    # replicate padding only (T+K-1 rows per batch); im2col happens inside the kernel
    xpad = jnp.concatenate(
        [jnp.repeat(x[:, :1], pad, axis=1), x, jnp.repeat(x[:, -1:], pad, axis=1)],
        axis=1)                                                           # (B, T+K-1, C)
    Tp = T + K - 1
    return pl.pallas_call(
        functools.partial(conv_in_kernel, ksize=K, out_t=T),
        out_shape=jax.ShapeDtypeStruct((B * T, C), BF16),
        grid=(B,),
        in_specs=[pl.BlockSpec((None, Tp, C), lambda i: (i, 0, 0)),
                  _const_spec((K, C, C), lambda i: (0, 0, 0)),
                  _const_spec((1, C), lambda i: (0, 0))],
        out_specs=pl.BlockSpec((T, C), lambda i: (i, 0)),
        compiler_params=_PARALLEL1,
    )(xpad, w, b.reshape(1, C))


def pallas_attention_block(x, wqkv, bqkv, wo, bo, gamma, beta, *, seq_len, num_heads):
    # x: (B*T, D) bf16; one fused kernel per batch element (QKV+MHA+out-proj+res+LN)
    M, D = x.shape
    B = M // seq_len
    scale = 1.0 / math.sqrt(D // num_heads)
    return pl.pallas_call(
        functools.partial(attn_block_kernel, num_heads=num_heads, scale=scale),
        out_shape=jax.ShapeDtypeStruct((M, D), BF16),
        grid=(B,),
        in_specs=[pl.BlockSpec((seq_len, D), lambda b: (b, 0)),
                  _const_spec((D, 3 * D), lambda b: (0, 0)),
                  _const_spec((1, 3 * D), lambda b: (0, 0)),
                  _const_spec((D, D), lambda b: (0, 0)),
                  _const_spec((1, D), lambda b: (0, 0)),
                  _const_spec((1, D), lambda b: (0, 0)),
                  _const_spec((1, D), lambda b: (0, 0))],
        out_specs=pl.BlockSpec((seq_len, D), lambda b: (b, 0)),
        compiler_params=_PARALLEL1,
    )(x, wqkv, bqkv.reshape(1, 3 * D), wo, bo.reshape(1, D),
      gamma.reshape(1, D), beta.reshape(1, D))


# ----------------------------------- model glue -----------------------------------------

def sinusoid_pe(T, D):
    # TODO(synk): PositionalEncoding assumed standard sinusoidal (module source not given);
    # its dropout is eval-mode identity.
    pos = jnp.arange(T, dtype=jnp.float32)[:, None]
    div = jnp.exp(jnp.arange(0, D, 2, dtype=jnp.float32) * (-math.log(10000.0) / D))
    pe = jnp.zeros((T, D), jnp.float32)
    pe = pe.at[:, 0::2].set(jnp.sin(pos * div))
    pe = pe.at[:, 1::2].set(jnp.cos(pos * div))
    return pe


def transformer_layer(x, lp, seq_len, num_heads, out_dtype=BF16):
    # TODO(synk): post-LN (BERT-style) ordering assumed for the Transformer submodule.
    # fused attention block: QKV proj + MHA + out proj + residual + LayerNorm (1 kernel)
    x = pallas_attention_block(x, lp["wqkv"], lp["bqkv"], lp["wo"], lp["bo"],
                               lp["g1"], lp["be1"], seq_len=seq_len, num_heads=num_heads)
    # FFN: fused w1+GELU kernel, then fused w2 + residual + LayerNorm
    h = pallas_linear(x, lp["w1"], lp["b1"], act="gelu")
    x = pallas_linear_add_ln(h, lp["w2"], lp["b2"], x, lp["g2"], lp["be2"],
                             out_dtype=out_dtype)
    return x


def transformer_encoder_forward(params, motion, num_heads):
    B, T, F = motion.shape
    D = params["w_fm"].shape[1]

    # feature_mapping: Linear + LeakyReLU(0.2)  -> bf16 activations from here on
    x = pallas_linear(motion.reshape(B * T, F), params["w_fm"], params["b_fm"], act="leaky")

    # squasher: Conv1d(replicate pad) + LeakyReLU + InstanceNorm1d — in-kernel im2col
    x = pallas_conv_squash(x.reshape(B, T, D), params["w_conv"], params["b_conv"])

    # encoder_linear_embedding + encoder_pos_embedding (fused; PE shared across batch)
    pe = sinusoid_pe(T, D)
    x = pallas_emb_pe(x, params["w_emb"], params["b_emb"], pe)

    # encoder_transformer (mask is None -> unmasked attention); final layer emits f32
    n_layers = len(params["layers"])
    for li, lp in enumerate(params["layers"]):
        x = transformer_layer(x, lp, T, num_heads,
                              out_dtype=jnp.float32 if li == n_layers - 1 else BF16)
    return x.reshape(B, T, D)


def init_params(key, nfeats, D, H, L, I, K):
    # weights stored in bf16 (MXU operand dtype); biases / LN params stay f32
    def dense(k, shp, scale=0.02):
        return (scale * jax.random.normal(k, shp, dtype=jnp.float32)).astype(BF16)

    keys = iter(jax.random.split(key, 3 + 4 * L))
    p = {
        "w_fm": dense(next(keys), (nfeats, D)),
        "b_fm": jnp.zeros((D,), jnp.float32),
        "w_conv": dense(next(keys), (K, D, D)),   # [k, Cin, Cout] == torch W[Cout, Cin, k]
        "b_conv": jnp.zeros((D,), jnp.float32),
        "w_emb": dense(next(keys), (D, D)),
        "b_emb": jnp.zeros((D,), jnp.float32),
        "layers": [],
    }
    for _ in range(L):
        lp = {
            "wqkv": dense(next(keys), (D, 3 * D)), "bqkv": jnp.zeros((3 * D,), jnp.float32),
            "wo": dense(next(keys), (D, D)), "bo": jnp.zeros((D,), jnp.float32),
            "g1": jnp.ones((D,), jnp.float32), "be1": jnp.zeros((D,), jnp.float32),
            "w1": dense(next(keys), (D, I)), "b1": jnp.zeros((I,), jnp.float32),
            "w2": dense(next(keys), (I, D)), "b2": jnp.zeros((D,), jnp.float32),
            "g2": jnp.ones((D,), jnp.float32), "be2": jnp.zeros((D,), jnp.float32),
        }
        p["layers"].append(lp)
    return p


if __name__ == "__main__":
    # small config (args override the defaults of the PyTorch module)
    B, T = 2, 16
    NFEATS, D, H, L, I, K = 16, 32, 4, 2, 48, 5

    key = jax.random.PRNGKey(0)
    kp, kx = jax.random.split(key)
    params = init_params(kp, NFEATS, D, H, L, I, K)
    motion = jax.random.normal(kx, (B, T, NFEATS), dtype=jnp.float32)

    out = transformer_encoder_forward(params, motion, num_heads=H)
    out = jax.block_until_ready(out)
    assert out.shape == (B, T, D) and out.dtype == jnp.float32
    assert bool(jnp.all(jnp.isfinite(out)))
    print("KERNEL_OK")
</pallas_src>

<mosaic_0001>
module attributes {stable_mosaic.version = 11 : i64} {
  func.func @k(%arg0: i32, %arg1: memref<8x128xf32, #tpu.memory_space<vmem>>, %arg2: memref<8x128xf32, #tpu.memory_space<vmem>>) attributes {dimension_semantics = [#tpu.dimension_semantics<arbitrary>], iteration_bounds = array<i64: 1>, scalar_prefetch = 0 : i64, scratch_operands = 0 : i64, tpu.core_type = #tpu.core_type<tc>, window_params = [{pipeline_mode = #tpu.pipeline_mode<synchronous>, transform_indices = @transform_0, window_bounds = array<i64: 8, 128>}, {pipeline_mode = #tpu.pipeline_mode<synchronous>, transform_indices = @transform_1, window_bounds = array<i64: 8, 128>}]} {
    %c0 = arith.constant 0 : index
    %c0_0 = arith.constant 0 : index
    %0 = vector.load %arg1[%c0, %c0_0] : memref<8x128xf32, #tpu.memory_space<vmem>>, vector<8x128xf32>
    %cst = arith.constant 2.000000e+00 : f32
    %1 = vector.broadcast %cst : f32 to vector<8x128xf32>
    %2 = arith.mulf %0, %1 : vector<8x128xf32>
    %c0_1 = arith.constant 0 : index
    %c0_2 = arith.constant 0 : index
    %3 = vector.load %arg2[%c0_1, %c0_2] : memref<8x128xf32, #tpu.memory_space<vmem>>, vector<8x128xf32>
    tpu.vector_store %arg2[%c0_1, %c0_2], %2 {strides = array<i32>} : memref<8x128xf32, #tpu.memory_space<vmem>>, vector<8x128xf32>,
    return
  }
  func.func @transform_0(%arg0: i32) -> (i32, i32) {
    %c0_i32 = arith.constant 0 : i32
    %c0_i32_0 = arith.constant 0 : i32
    %c0_i32_1 = arith.constant 0 : i32
    return %c0_i32, %c0_i32_0 : i32, i32
  }
  func.func @transform_1(%arg0: i32) -> (i32, i32) {
    %c0_i32 = arith.constant 0 : i32
    %c0_i32_0 = arith.constant 0 : i32
    %c0_i32_1 = arith.constant 0 : i32
    return %c0_i32, %c0_i32_0 : i32, i32
  }
}

module attributes {stable_mosaic.version = 11 : i64} {
  func.func @matmul_bias_kernel(%arg0: i32, %arg1: memref<32x16xf32, #tpu.memory_space<vmem>>, %arg2: memref<16x32xbf16, #tpu.memory_space<vmem>>, %arg3: memref<1x32xf32, #tpu.memory_space<vmem>>, %arg4: memref<32x32xbf16, #tpu.memory_space<vmem>>) attributes {dimension_semantics = [#tpu.dimension_semantics<parallel>], iteration_bounds = array<i64: 1>, scalar_prefetch = 0 : i64, scratch_operands = 0 : i64, tpu.core_type = #tpu.core_type<tc>, window_params = [{transform_indices = @transform_0, window_bounds = array<i64: 32, 16>}, {pipeline_mode = #tpu.pipeline_mode<synchronous>, transform_indices = @transform_1, window_bounds = array<i64: 16, 32>}, {pipeline_mode = #tpu.pipeline_mode<synchronous>, transform_indices = @transform_2, window_bounds = array<i64: 1, 32>}, {transform_indices = @transform_3, window_bounds = array<i64: 32, 32>}]} {
    %c0 = arith.constant 0 : index
    %c0_0 = arith.constant 0 : index
    %0 = vector.load %arg1[%c0, %c0_0] : memref<32x16xf32, #tpu.memory_space<vmem>>, vector<32x16xf32>
    %1 = arith.truncf %0 : vector<32x16xf32> to vector<32x16xbf16>
    %c0_1 = arith.constant 0 : index
    %c0_2 = arith.constant 0 : index
    %2 = vector.load %arg2[%c0_1, %c0_2] : memref<16x32xbf16, #tpu.memory_space<vmem>>, vector<16x32xbf16>
    %cst = arith.constant dense<0.000000e+00> : vector<32x32xf32>
    %3 = tpu.matmul %1, %2, %cst {dimension_numbers = #tpu.dot_dimension_numbers<[1], [0], [0], [1], [0, 0, 1, 1], [], []>} : vector<32x16xbf16>, vector<16x32xbf16>, vector<32x32xf32> -> vector<32x32xf32>
    %c0_3 = arith.constant 0 : index
    %c0_4 = arith.constant 0 : index
    %4 = vector.load %arg3[%c0_3, %c0_4] : memref<1x32xf32, #tpu.memory_space<vmem>>, vector<1x32xf32>
    %5 = vector.broadcast %4 : vector<1x32xf32> to vector<32x32xf32>
    %6 = arith.addf %3, %5 : vector<32x32xf32>
    %cst_5 = arith.constant 0.000000e+00 : f32
    %7 = vector.broadcast %cst_5 : f32 to vector<32x32xf32>
    %8 = arith.cmpf oge, %6, %7 : vector<32x32xf32>
    %cst_6 = arith.constant 2.000000e-01 : f32
    %9 = vector.broadcast %cst_6 : f32 to vector<32x32xf32>
    %10 = arith.mulf %9, %6 : vector<32x32xf32>
    %11 = arith.select %8, %6, %10 : vector<32x32xi1>, vector<32x32xf32>
    %12 = arith.truncf %11 : vector<32x32xf32> to vector<32x32xbf16>
    %c0_7 = arith.constant 0 : index
    %c0_8 = arith.constant 0 : index
    %13 = vector.load %arg4[%c0_7, %c0_8] : memref<32x32xbf16, #tpu.memory_space<vmem>>, vector<32x32xbf16>
    tpu.vector_store %arg4[%c0_7, %c0_8], %12 {strides = array<i32>} : memref<32x32xbf16, #tpu.memory_space<vmem>>, vector<32x32xbf16>,
    return
  }
  func.func @transform_0(%arg0: i32) -> (i32, i32) {
    %c0_i32 = arith.constant 0 : i32
    %c0_i32_0 = arith.constant 0 : i32
    return %arg0, %c0_i32 : i32, i32
  }
  func.func @transform_1(%arg0: i32) -> (i32, i32) {
    %c0_i32 = arith.constant 0 : i32
    %c0_i32_0 = arith.constant 0 : i32
    %c0_i32_1 = arith.constant 0 : i32
    return %c0_i32, %c0_i32_0 : i32, i32
  }
  func.func @transform_2(%arg0: i32) -> (i32, i32) {
    %c0_i32 = arith.constant 0 : i32
    %c0_i32_0 = arith.constant 0 : i32
    %c0_i32_1 = arith.constant 0 : i32
    return %c0_i32, %c0_i32_0 : i32, i32
  }
  func.func @transform_3(%arg0: i32) -> (i32, i32) {
    %c0_i32 = arith.constant 0 : i32
    %c0_i32_0 = arith.constant 0 : i32
    return %arg0, %c0_i32 : i32, i32
  }
}

</mosaic_0001>

<bundles_post_ra>
// kernel: tpu_custom_call.1
= control target key start
LH: loop header
LB: loop body
LE: loop exit
PB: predicated region body
PF: predicated region fallthrough
CT: control target
= control target key end

     0   :  { %6 = vsyncpa [#allocation3], 0  ;;  %s103_s0 = inlined_call_operand.hbm [shape: f32[8,128], index: 0, kind: input, shape index: {}]   ;;  %s104_s1 = inlined_call_operand.hbm [shape: f32[8,128], index: 1, kind: output, shape index: {}]  }
   0x1   :  { %7 = vsyncpa [#allocation4], 0  ;;  %s85_s6 = smov [#allocation2]  }
   0x2   :  { %s14_s7 = sshll.u32 %s85_s6, 4  ;;  %s15_s7 = int_to_ptr.vmem [resolvable:$true] %s14_s7 }
   0x3   :  { %s49_s8 = scalar_lea.vmem %s15_s7, 128  ;;  %p54_p1 = scmp.lt.s32.totalorder %s15_s7, %s15_s7 }
   0x4   :  { %p50_p0 = scmp.ne.s32.totalorder %s15_s7, %s49_s8  ;;  %p55_p2 = scmp.lt.s32.totalorder %s49_s8, %s49_s8 }
   0x6   :  { %p56_p3 = por %p55_p2, %p54_p1 }
   0x8   :  { %p57_p4 = pnand %p56_p3, %p50_p0 }
   0xa   :  { %60 = shalt.err (!%p57_p4)
}
   0xb   :  { %17 = dma.hbm_to_vmem [thread:$0]  %s103_s0, 128, %s15_s7, [#allocation3]  }
   0xc   :  { %81 = dma.done.wait [#allocation3], 128  }
   0xd   :  { %82 = vsyncadd [#allocation3], 4294967168  ;;  %s86_s11 = smov [#allocation5]   ;;  %v21_v0 = vld [vmem:[#allocation2] sm:$0xff] }
   0xe   :  { %s30_s12 = sshll.u32 %s86_s11, 4  ;;  %v22_v1 = vmul.f32 2.0, %v21_v0  ;;  %s31_s12 = int_to_ptr.vmem [resolvable:$true] %s30_s12 }
   0xf   :  { %s61_s13 = scalar_lea.vmem %s31_s12, 128  ;;  %p66_p6 = scmp.lt.s32.totalorder %s31_s12, %s31_s12 }
  0x10   :  { %23 = vst [vmem:[#allocation5] sm:$0xff] %v22_v1  ;;  %p62_p5 = scmp.ne.s32.totalorder %s31_s12, %s61_s13  ;;  %p67_p7 = scmp.lt.s32.totalorder %s61_s13, %s61_s13 }
  0x12   :  { %p68_p8 = por %p67_p7, %p66_p6 }
  0x14   :  { %p69_p9 = pnand %p68_p8, %p62_p5 }
  0x16   :  { %72 = shalt.err (!%p69_p9)
}
  0x17   :  { %33 = dma.vmem_to_hbm [thread:$0]  %s31_s12, 128, %s104_s1, [#allocation4]  }
  0x18   :  { %83 = dma.done.wait [#allocation4], 128  }
  0x19   :  { %84 = vsyncadd [#allocation4], 4294967168 }
  0x1a   :  { %37 = vsyncpa [#allocation3], 1 }
  0x1b   :  { %38 = vsyncpa [#allocation4], 1 }

// kernel: tpu_custom_call.1
= control target key start
LH: loop header
LB: loop body
LE: loop exit
PB: predicated region body
PF: predicated region fallthrough
CT: control target
= control target key end

     0   :  { %vm37_vm0 = vcmask 130048   ;;  %s237_s0 = inlined_call_operand.vmem [shape: f32[32,16], index: 0, kind: input, shape index: {}]   ;;  %s238_s1 = inlined_call_operand.vmem [shape: bf16[16,32], index: 1, kind: input, shape index: {}]   ;;  %s239_s2 = inlined_call_operand.vmem [shape: f32[1,32], index: 2, kind: input, shape index: {}]   ;;  %s240_s3 = inlined_call_operand.hbm [shape: bf16[32,32], index: 3, kind: output, shape index: {}]  }
   0x1   :  { %v166_v0 = vld [vmem:[%s238_s1] sm:$0xff]   ;;  %v17_v2 = vld [vmem:[%s237_s0 + $0x8] sm:$0xff]  ;;  %v18_v3 = vld [vmem:[%s237_s0 + $0x10] sm:$0xff] }
   0x2   :  { %v16_v1 = vld [vmem:[%s237_s0] sm:$0xff]  ;;  %157 = vmatprep.subr.bf16.mxu0 %v166_v0  ;;  %v19_v5 = vld [vmem:[%s237_s0 + $0x18] sm:$0xff] }
   0x3   :  { %v20_v4 = vpack.c.bf16 %v17_v2, %v16_v1 }
   0x4   :  { %8 = vsyncpa [#allocation3], 0  ;;  %158 = vmatpush3.bf16.msra.mxu0 %v166_v0  ;;  %v21_v6 = vpack.c.bf16 %v19_v5, %v18_v3  ;;  %v142_v7 = vld [vmem:[%s239_s2] ss:$0 sm:$0xff]  ;;  %vm121_vm2 = vcmask 257024   ;;  %s189_s0 = smov [#allocation2]  }
   0x5   :  { %159 = vmatprep.mubr.msk.bf16.mxu0 %vm37_vm0, %v20_v4  ;;  %s131_s2 = sshll.u32 %s189_s0, 4  ;;  %s132_s2 = int_to_ptr.vmem [resolvable:$true] %s131_s2 }
   0x6   :  { %s167_s23 = scalar_lea.vmem %s132_s2, 256  ;;  %p172_p1 = scmp.lt.s32.totalorder %s132_s2, %s132_s2 }
   0x7   :  { %160 = vmatmul.mubr.msk.bf16.vlgmr.msra.gmra.mxu0 %vm37_vm0, %v21_v6  ;;  %p168_p0 = scmp.ne.s32.totalorder %s132_s2, %s167_s23  ;;  %p173_p2 = scmp.lt.s32.totalorder %s167_s23, %s167_s23 }
   0x9   :  { %p174_p3 = por %p173_p2, %p172_p1 }
   0xb   :  { %p175_p4 = pnand %p174_p3, %p168_p0 }
  0xc7   :  { %v161_v8 = vpop.f32.mrf.mxu0 }
  0xc8   :  { %v87_v9 = vadd.f32 %v161_v8, %v142_v7 }
  0xc9   :  { %v78_v10 = vpop.f32.mrf.mxu0 }
  0xca   :  { %vm95_vm1 = vcmp.ge.f32.partialorder %v87_v9, 0.0  ;;  %v99_v11 = vmul.f32 0.2, %v87_v9  ;;  %v79_v12 = vadd.f32 %v142_v7, %v78_v10 }
  0xcb   :  { %v162_v13 = vpop.f32.mrf.mxu0 }
  0xcc   :  { %v103_v14 = vsel %vm95_vm1, %v87_v9, %v99_v11  ;;  %vm93_vm3 = vcmp.ge.f32.partialorder %v79_v12, 0.0  ;;  %v97_v15 = vmul.f32 0.2, %v79_v12  ;;  %v90_v16 = vadd.f32 %v162_v13, %v142_v7 }
  0xcd   :  { %v152_v17 = vpack.c.bf16 %v103_v14, %v103_v14  ;;  %v81_v18 = vpop.f32.mrf.mxu0 }
  0xce   :  { %v101_v19 = vsel %vm93_vm3, %v79_v12, %v97_v15  ;;  %vm96_vm4 = vcmp.ge.f32.partialorder %v90_v16, 0.0  ;;  %v100_v20 = vmul.f32 0.2, %v90_v16  ;;  %v82_v21 = vadd.f32 %v142_v7, %v81_v18 }
  0xcf   :  { %124 = vst.msk [vmem:[#allocation2 + $0x8] sm:$0xf] %vm121_vm2, %v152_v17  ;;  %v150_v22 = vpack.c.bf16 %v101_v19, %v101_v19 }
  0xd0   :  { %v104_v23 = vsel %vm96_vm4, %v90_v16, %v100_v20  ;;  %vm94_vm5 = vcmp.ge.f32.partialorder %v82_v21, 0.0  ;;  %v98_v24 = vmul.f32 0.2, %v82_v21 }
  0xd1   :  { %122 = vst.msk [vmem:[#allocation2] sm:$0xf] %vm121_vm2, %v150_v22  ;;  %v153_v25 = vpack.c.bf16 %v104_v23, %v104_v23 }
  0xd2   :  { %v102_v26 = vsel %vm94_vm5, %v82_v21, %v98_v24 }
  0xd3   :  { %125 = vst.msk [vmem:[#allocation2 + $0xc] sm:$0xf] %vm121_vm2, %v153_v25  ;;  %v151_v27 = vpack.c.bf16 %v102_v26, %v102_v26 }
  0xd5   :  { %123 = vst.msk [vmem:[#allocation2 + $0x4] sm:$0xf] %vm121_vm2, %v151_v27 }
  0xd6   :  { %178 = shalt.err (!%p175_p4)
}
  0xd7   :  { %s190_s24 = smov 64   ;;  %s191_s25 = smov 4  }
  0xd8   :  { %137 = dma.vmem_to_hbm [thread:$0]  %s132_s2, 256, %s240_s3, [#allocation3], %s190_s24, %s190_s24, %s191_s25  }
  0xd9   :  { %187 = dma.done.wait [#allocation3], 256  }
  0xda   :  { %188 = vsyncadd [#allocation3], 4294967040 }
  0xdb   :  { %141 = vsyncpa [#allocation3], 1 }

</bundles_post_ra>
